<compile_context>
chip_gen: v6e
topology: v6e:2x2x1
jax: 0.10.0
libtpu: 0.0.40
codegen_flags: <defaults>
</compile_context>

<pallas_src>
import functools

import jax
import jax.numpy as jnp
from jax.experimental import pallas as pl
from jax.experimental.pallas import tpu as pltpu

NEG_INF = -1e30  # stand-in for torch masked_fill_(-inf); avoids NaN on all-masked rows


def _layer_norm(v, g, b, eps=1e-5):
    mu = jnp.mean(v, axis=-1, keepdims=True)
    var = jnp.mean((v - mu) ** 2, axis=-1, keepdims=True)
    return (v - mu) * jax.lax.rsqrt(var + eps) * g + b


def encoder_block_kernel(
    lens_ref,                        # SMEM (B,) int32   (scalar prefetch)
    xq_ref,                          # (1, TQ, H) f32    query tile / residual
    xk_ref,                          # (1, T,  H) f32    full sequence (K/V source)
    wq_ref, wk_ref, wo_ref,          # (H, H) bf16
    ln_attn_g_ref, ln_attn_b_ref,    # (1, H) f32
    ln_fc_g_ref, ln_fc_b_ref,        # (1, H) f32
    w1_ref, b1_ref, w2_ref, b2_ref,  # (H,4H) bf16, (1,4H) f32, (4H,H) bf16, (1,H) f32
    out_ref,                         # (1, TQ, H) f32
    *, n_splits, dk, seq_len,
):
    b = pl.program_id(0)
    bf16 = jnp.bfloat16

    xq = xq_ref[0]                                   # (TQ, H) f32
    xk = xk_ref[0]                                   # (T,  H) f32
    tq = xq.shape[0]
    hidden = xq.shape[1]

    # ---------------- pre-LN (f32, VPU) ----------------
    zq = _layer_norm(xq, ln_attn_g_ref[...], ln_attn_b_ref[...])
    zk = _layer_norm(xk, ln_attn_g_ref[...], ln_attn_b_ref[...])

    # ---------------- projections (bf16 in, f32 accumulate on the MXU) ----------------
    qp = jnp.dot(zq.astype(bf16), wq_ref[...], preferred_element_type=jnp.float32)  # (TQ, H)
    kp = jnp.dot(zk.astype(bf16), wk_ref[...], preferred_element_type=jnp.float32)  # (T,  H)
    # Reference bug: V projected with K_linear; here Q == K == V so V-proj == kp.
    kp_b = kp.astype(bf16)                           # shared by scores and context

    # ---------------- key-padding mask rebuilt in-kernel ----------------
    key_pos = jax.lax.broadcasted_iota(jnp.int32, (tq, seq_len), 1)
    mask = key_pos >= lens_ref[b]                    # (TQ, T)  True == masked

    # ---------------- multi-head attention (per-head, no .T / no concat) ----------------
    scale = 1.0 / float(dk) ** 0.5
    wo = wo_ref[...]                                 # (H, H) bf16
    attn_out = jnp.zeros((tq, hidden), jnp.float32)
    for h in range(n_splits):                        # static head loop
        lo, hi = h * dk, (h + 1) * dk
        qh = qp[:, lo:hi].astype(bf16)               # (TQ, dk)
        kh = kp_b[:, lo:hi]                          # (T,  dk)  (== vh, see bug note)
        s = jax.lax.dot_general(qh, kh, (((1,), (1,)), ((), ())),
                                preferred_element_type=jnp.float32)   # (TQ, T)
        s = jnp.where(mask, NEG_INF, s) * scale      # mask-then-scale, as in torch
        s = s - jnp.max(s, axis=-1, keepdims=True)
        e = jnp.exp(s)
        p = e * pl.reciprocal(jnp.sum(e, axis=-1, keepdims=True), approx=True)
        ctx = jnp.dot(p.astype(bf16), kh, preferred_element_type=jnp.float32)  # (TQ, dk)
        # output projection accumulated per head -> no lane-dim concatenate
        attn_out = attn_out + jnp.dot(ctx.astype(bf16), wo[lo:hi, :],
                                      preferred_element_type=jnp.float32)
    z = xq + attn_out                                # residual (attn_dropout = identity)

    # ---------------- feed-forward ----------------
    hfc = _layer_norm(z, ln_fc_g_ref[...], ln_fc_b_ref[...])
    h1 = jnp.dot(hfc.astype(bf16), w1_ref[...],
                 preferred_element_type=jnp.float32) + b1_ref[...]
    h1 = jnp.maximum(h1, 0.0)                        # ReLU (use_leaky_relu=False)
    z = z + jnp.dot(h1.astype(bf16), w2_ref[...],
                    preferred_element_type=jnp.float32) + b2_ref[...]

    out_ref[0] = z


def encoder_block(x, lengths, params, n_splits, q_tile=None):
    """EncoderBlock.forward (eval mode).  Returns z; the module's second return
    value is the mask, which is passed through unchanged (here: `lengths`)."""
    B, T, H = x.shape
    assert H % n_splits == 0
    dk = H // n_splits
    if q_tile is None:
        q_tile = T if T <= 128 else 128
    assert T % q_tile == 0, "sequence length must be divisible by the query tile"
    nq = T // q_tile

    bf16 = jnp.bfloat16
    wq = params["wq"].astype(bf16)
    wk = params["wk"].astype(bf16)
    wo = params["wo"].astype(bf16)
    w1 = params["w_fc1"].astype(bf16)
    w2 = params["w_fc2"].astype(bf16)

    kernel = functools.partial(encoder_block_kernel,
                               n_splits=n_splits, dk=dk, seq_len=T)

    # Grid-invariant operands (weights / LN params / biases).
    # TODO(synk): single-buffer these via pipeline_mode=pl.Buffered(1) for the
    # v7x 64 MiB VMEM budget once buffer_count=1 is confirmed supported.
    def const2d(shape):
        return pl.BlockSpec(shape, lambda b, qi, lens: (0, 0))

    grid_spec = pltpu.PrefetchScalarGridSpec(
        num_scalar_prefetch=1,
        grid=(B, nq),
        in_specs=[
            pl.BlockSpec((1, q_tile, H), lambda b, qi, lens: (b, qi, 0)),  # x (query tile)
            pl.BlockSpec((1, T, H),      lambda b, qi, lens: (b, 0, 0)),   # x (full, K/V)
            const2d((H, H)), const2d((H, H)), const2d((H, H)),             # Wq, Wk, Wo
            const2d((1, H)), const2d((1, H)),                              # attn_norm g, b
            const2d((1, H)), const2d((1, H)),                              # fc_norm g, b
            const2d((H, 4 * H)), const2d((1, 4 * H)),                      # fc W1, b1
            const2d((4 * H, H)), const2d((1, H)),                          # fc W2, b2
        ],
        out_specs=pl.BlockSpec((1, q_tile, H), lambda b, qi, lens: (b, qi, 0)),
    )

    cost = pl.CostEstimate(
        flops=int(B * (6 * T * H * H + 4 * T * T * H + 16 * T * H * H)),
        transcendentals=int(B * (n_splits * T * T + 4 * T)),
        bytes_accessed=int(4 * B * T * H * 3 + 2 * 11 * H * H + 4 * 12 * H + 4 * B),
    )

    return pl.pallas_call(
        kernel,
        out_shape=jax.ShapeDtypeStruct((B, T, H), jnp.float32),
        grid_spec=grid_spec,
        compiler_params=pltpu.CompilerParams(
            dimension_semantics=("parallel", "parallel")),
        cost_estimate=cost,
    )(
        lengths.astype(jnp.int32),
        x, x,
        wq, wk, wo,
        params["ln_attn_g"], params["ln_attn_b"],
        params["ln_fc_g"], params["ln_fc_b"],
        w1, params["b_fc1"], w2, params["b_fc2"],
    )


def _mxu_round(v):
    # bf16-round the matmul inputs (products then fit exactly in f32), matching
    # the kernel's bf16-in / f32-accumulate MXU numerics.
    return v.astype(jnp.bfloat16).astype(jnp.float32)


def encoder_block_ref(x, lengths, params, n_splits):
    """Pure-JAX reference with identical math/precision, for a correctness check."""
    B, T, H = x.shape
    dk = H // n_splits
    p = params

    def ln(v, g, b):
        mu = jnp.mean(v, axis=-1, keepdims=True)
        var = jnp.mean((v - mu) ** 2, axis=-1, keepdims=True)
        return (v - mu) / jnp.sqrt(var + 1e-5) * g + b

    mask = jnp.arange(T)[None, None, :] >= lengths[:, None, None]   # (B, 1, T)

    z = ln(x, p["ln_attn_g"], p["ln_attn_b"])
    qp = jnp.einsum("btd,dh->bth", _mxu_round(z), _mxu_round(p["wq"]))
    kp = jnp.einsum("btd,dh->bth", _mxu_round(z), _mxu_round(p["wk"]))
    vp = kp   # reference bug: V projected with K_linear, and V == K == Q here
    attn = jnp.zeros_like(x)
    for h in range(n_splits):
        sl = slice(h * dk, (h + 1) * dk)
        s = jnp.einsum("bqd,bkd->bqk", _mxu_round(qp[..., sl]), _mxu_round(kp[..., sl]))
        s = jnp.where(mask, NEG_INF, s)
        pr = jax.nn.softmax(s / dk ** 0.5, axis=-1)
        ctx = jnp.einsum("bqk,bkd->bqd", _mxu_round(pr), _mxu_round(vp[..., sl]))
        attn = attn + jnp.einsum("bqd,dh->bqh", _mxu_round(ctx), _mxu_round(p["wo"][sl, :]))
    z = x + attn

    h1 = ln(z, p["ln_fc_g"], p["ln_fc_b"])
    h1 = jnp.maximum(
        jnp.einsum("bth,hf->btf", _mxu_round(h1), _mxu_round(p["w_fc1"])) + p["b_fc1"], 0.0)
    return z + jnp.einsum("btf,fh->bth", _mxu_round(h1), _mxu_round(p["w_fc2"])) + p["b_fc2"]


if __name__ == "__main__":
    B, T, H, n_splits = 2, 8, 32, 4

    key = jax.random.PRNGKey(0)
    ks = jax.random.split(key, 16)
    s = 1.0 / (H ** 0.5)

    x = jax.random.normal(ks[0], (B, T, H), jnp.float32)
    # Per-batch valid key lengths (standard encoder padding mask: key j masked iff
    # j >= length[b]).  Batch element 1 has two padded positions.
    lengths = jnp.array([T, T - 2], jnp.int32)

    # Weights stored in "x @ W" layout (transposed relative to torch nn.Linear.weight).
    params = {
        "wq": jax.random.normal(ks[1], (H, H), jnp.float32) * s,
        "wk": jax.random.normal(ks[2], (H, H), jnp.float32) * s,
        "wo": jax.random.normal(ks[3], (H, H), jnp.float32) * s,
        # NOTE: V_linear of the torch module is unused in its forward (bug), so it
        # is intentionally not materialized here.
        "ln_attn_g": 1.0 + 0.1 * jax.random.normal(ks[4], (1, H), jnp.float32),
        "ln_attn_b": 0.1 * jax.random.normal(ks[5], (1, H), jnp.float32),
        "ln_fc_g": 1.0 + 0.1 * jax.random.normal(ks[6], (1, H), jnp.float32),
        "ln_fc_b": 0.1 * jax.random.normal(ks[7], (1, H), jnp.float32),
        "w_fc1": jax.random.normal(ks[8], (H, 4 * H), jnp.float32) * s,
        "b_fc1": 0.1 * jax.random.normal(ks[9], (1, 4 * H), jnp.float32),
        "w_fc2": jax.random.normal(ks[10], (4 * H, H), jnp.float32) * (0.5 / (H ** 0.5)),
        "b_fc2": 0.1 * jax.random.normal(ks[11], (1, H), jnp.float32),
    }

    out = encoder_block(x, lengths, params, n_splits)
    out = jax.block_until_ready(out)

    ref = encoder_block_ref(x, lengths, params, n_splits)
    assert out.shape == (B, T, H)
    assert jnp.allclose(out, ref, rtol=2e-2, atol=2e-2), "mismatch vs JAX reference"

    print("KERNEL_OK")
</pallas_src>

<mosaic_0001>
module attributes {stable_mosaic.version = 11 : i64} {
  func.func @encoder_block_kernel(%arg0: i32, %arg1: i32, %arg2: memref<2xi32, #tpu.memory_space<smem>>, %arg3: memref<1x8x32xf32, #tpu.memory_space<vmem>>, %arg4: memref<1x8x32xf32, #tpu.memory_space<vmem>>, %arg5: memref<32x32xbf16, #tpu.memory_space<vmem>>, %arg6: memref<32x32xbf16, #tpu.memory_space<vmem>>, %arg7: memref<32x32xbf16, #tpu.memory_space<vmem>>, %arg8: memref<1x32xf32, #tpu.memory_space<vmem>>, %arg9: memref<1x32xf32, #tpu.memory_space<vmem>>, %arg10: memref<1x32xf32, #tpu.memory_space<vmem>>, %arg11: memref<1x32xf32, #tpu.memory_space<vmem>>, %arg12: memref<32x128xbf16, #tpu.memory_space<vmem>>, %arg13: memref<1x128xf32, #tpu.memory_space<vmem>>, %arg14: memref<128x32xbf16, #tpu.memory_space<vmem>>, %arg15: memref<1x32xf32, #tpu.memory_space<vmem>>, %arg16: memref<1x8x32xf32, #tpu.memory_space<vmem>>) attributes {dimension_semantics = [#tpu.dimension_semantics<parallel>, #tpu.dimension_semantics<parallel>], iteration_bounds = array<i64: 2, 1>, scalar_prefetch = 1 : i64, scratch_operands = 0 : i64, tpu.core_type = #tpu.core_type<tc>, window_params = [{transform_indices = @transform_0, window_bounds = array<i64: 1, 8, 32>}, {transform_indices = @transform_1, window_bounds = array<i64: 1, 8, 32>}, {pipeline_mode = #tpu.pipeline_mode<synchronous>, transform_indices = @transform_2, window_bounds = array<i64: 32, 32>}, {pipeline_mode = #tpu.pipeline_mode<synchronous>, transform_indices = @transform_3, window_bounds = array<i64: 32, 32>}, {pipeline_mode = #tpu.pipeline_mode<synchronous>, transform_indices = @transform_4, window_bounds = array<i64: 32, 32>}, {pipeline_mode = #tpu.pipeline_mode<synchronous>, transform_indices = @transform_5, window_bounds = array<i64: 1, 32>}, {pipeline_mode = #tpu.pipeline_mode<synchronous>, transform_indices = @transform_6, window_bounds = array<i64: 1, 32>}, {pipeline_mode = #tpu.pipeline_mode<synchronous>, transform_indices = @transform_7, window_bounds = array<i64: 1, 32>}, {pipeline_mode = #tpu.pipeline_mode<synchronous>, transform_indices = @transform_8, window_bounds = array<i64: 1, 32>}, {pipeline_mode = #tpu.pipeline_mode<synchronous>, transform_indices = @transform_9, window_bounds = array<i64: 32, 128>}, {pipeline_mode = #tpu.pipeline_mode<synchronous>, transform_indices = @transform_10, window_bounds = array<i64: 1, 128>}, {pipeline_mode = #tpu.pipeline_mode<synchronous>, transform_indices = @transform_11, window_bounds = array<i64: 128, 32>}, {pipeline_mode = #tpu.pipeline_mode<synchronous>, transform_indices = @transform_12, window_bounds = array<i64: 1, 32>}, {transform_indices = @transform_13, window_bounds = array<i64: 1, 8, 32>}]} {
    %c0 = arith.constant 0 : index
    %c0_0 = arith.constant 0 : index
    %c0_1 = arith.constant 0 : index
    %0 = vector.load %arg3[%c0, %c0_0, %c0_1] : memref<1x8x32xf32, #tpu.memory_space<vmem>>, vector<1x8x32xf32>
    %1 = vector.shape_cast %0 : vector<1x8x32xf32> to vector<8x32xf32>
    %c0_2 = arith.constant 0 : index
    %c0_3 = arith.constant 0 : index
    %c0_4 = arith.constant 0 : index
    %2 = vector.load %arg4[%c0_2, %c0_3, %c0_4] : memref<1x8x32xf32, #tpu.memory_space<vmem>>, vector<1x8x32xf32>
    %3 = vector.shape_cast %2 : vector<1x8x32xf32> to vector<8x32xf32>
    %c0_5 = arith.constant 0 : index
    %c0_6 = arith.constant 0 : index
    %4 = vector.load %arg8[%c0_5, %c0_6] : memref<1x32xf32, #tpu.memory_space<vmem>>, vector<1x32xf32>
    %c0_7 = arith.constant 0 : index
    %c0_8 = arith.constant 0 : index
    %5 = vector.load %arg9[%c0_7, %c0_8] : memref<1x32xf32, #tpu.memory_space<vmem>>, vector<1x32xf32>
    %cst = arith.constant dense<0.000000e+00> : vector<8xf32>
    %6 = vector.multi_reduction <add>, %1, %cst [1] : vector<8x32xf32> to vector<8xf32>
    %7 = vector.shape_cast %6 : vector<8xf32> to vector<8x1xf32>
    %cst_9 = arith.constant 3.200000e+01 : f32
    %8 = vector.broadcast %cst_9 : f32 to vector<8x1xf32>
    %9 = arith.divf %7, %8 : vector<8x1xf32>
    %10 = vector.broadcast %9 : vector<8x1xf32> to vector<8x32xf32>
    %11 = arith.subf %1, %10 : vector<8x32xf32>
    %12 = arith.mulf %11, %11 : vector<8x32xf32>
    %cst_10 = arith.constant dense<0.000000e+00> : vector<8xf32>
    %13 = vector.multi_reduction <add>, %12, %cst_10 [1] : vector<8x32xf32> to vector<8xf32>
    %14 = vector.shape_cast %13 : vector<8xf32> to vector<8x1xf32>
    %cst_11 = arith.constant 3.200000e+01 : f32
    %15 = vector.broadcast %cst_11 : f32 to vector<8x1xf32>
    %16 = arith.divf %14, %15 : vector<8x1xf32>
    %17 = vector.broadcast %9 : vector<8x1xf32> to vector<8x32xf32>
    %18 = arith.subf %1, %17 : vector<8x32xf32>
    %cst_12 = arith.constant 9.99999974E-6 : f32
    %19 = vector.broadcast %cst_12 : f32 to vector<8x1xf32>
    %20 = arith.addf %16, %19 : vector<8x1xf32>
    %21 = math.rsqrt %20 : vector<8x1xf32>
    %22 = vector.broadcast %21 : vector<8x1xf32> to vector<8x32xf32>
    %23 = arith.mulf %18, %22 : vector<8x32xf32>
    %24 = vector.broadcast %4 : vector<1x32xf32> to vector<8x32xf32>
    %25 = arith.mulf %23, %24 : vector<8x32xf32>
    %26 = vector.broadcast %5 : vector<1x32xf32> to vector<8x32xf32>
    %27 = arith.addf %25, %26 : vector<8x32xf32>
    %c0_13 = arith.constant 0 : index
    %c0_14 = arith.constant 0 : index
    %28 = vector.load %arg8[%c0_13, %c0_14] : memref<1x32xf32, #tpu.memory_space<vmem>>, vector<1x32xf32>
    %c0_15 = arith.constant 0 : index
    %c0_16 = arith.constant 0 : index
    %29 = vector.load %arg9[%c0_15, %c0_16] : memref<1x32xf32, #tpu.memory_space<vmem>>, vector<1x32xf32>
    %cst_17 = arith.constant dense<0.000000e+00> : vector<8xf32>
    %30 = vector.multi_reduction <add>, %3, %cst_17 [1] : vector<8x32xf32> to vector<8xf32>
    %31 = vector.shape_cast %30 : vector<8xf32> to vector<8x1xf32>
    %cst_18 = arith.constant 3.200000e+01 : f32
    %32 = vector.broadcast %cst_18 : f32 to vector<8x1xf32>
    %33 = arith.divf %31, %32 : vector<8x1xf32>
    %34 = vector.broadcast %33 : vector<8x1xf32> to vector<8x32xf32>
    %35 = arith.subf %3, %34 : vector<8x32xf32>
    %36 = arith.mulf %35, %35 : vector<8x32xf32>
    %cst_19 = arith.constant dense<0.000000e+00> : vector<8xf32>
    %37 = vector.multi_reduction <add>, %36, %cst_19 [1] : vector<8x32xf32> to vector<8xf32>
    %38 = vector.shape_cast %37 : vector<8xf32> to vector<8x1xf32>
    %cst_20 = arith.constant 3.200000e+01 : f32
    %39 = vector.broadcast %cst_20 : f32 to vector<8x1xf32>
    %40 = arith.divf %38, %39 : vector<8x1xf32>
    %41 = vector.broadcast %33 : vector<8x1xf32> to vector<8x32xf32>
    %42 = arith.subf %3, %41 : vector<8x32xf32>
    %cst_21 = arith.constant 9.99999974E-6 : f32
    %43 = vector.broadcast %cst_21 : f32 to vector<8x1xf32>
    %44 = arith.addf %40, %43 : vector<8x1xf32>
    %45 = math.rsqrt %44 : vector<8x1xf32>
    %46 = vector.broadcast %45 : vector<8x1xf32> to vector<8x32xf32>
    %47 = arith.mulf %42, %46 : vector<8x32xf32>
    %48 = vector.broadcast %28 : vector<1x32xf32> to vector<8x32xf32>
    %49 = arith.mulf %47, %48 : vector<8x32xf32>
    %50 = vector.broadcast %29 : vector<1x32xf32> to vector<8x32xf32>
    %51 = arith.addf %49, %50 : vector<8x32xf32>
    %52 = arith.truncf %27 : vector<8x32xf32> to vector<8x32xbf16>
    %c0_22 = arith.constant 0 : index
    %c0_23 = arith.constant 0 : index
    %53 = vector.load %arg5[%c0_22, %c0_23] : memref<32x32xbf16, #tpu.memory_space<vmem>>, vector<32x32xbf16>
    %cst_24 = arith.constant dense<0.000000e+00> : vector<8x32xf32>
    %54 = tpu.matmul %52, %53, %cst_24 {dimension_numbers = #tpu.dot_dimension_numbers<[1], [0], [0], [1], [0, 0, 1, 1], [], []>} : vector<8x32xbf16>, vector<32x32xbf16>, vector<8x32xf32> -> vector<8x32xf32>
    %55 = arith.truncf %51 : vector<8x32xf32> to vector<8x32xbf16>
    %c0_25 = arith.constant 0 : index
    %c0_26 = arith.constant 0 : index
    %56 = vector.load %arg6[%c0_25, %c0_26] : memref<32x32xbf16, #tpu.memory_space<vmem>>, vector<32x32xbf16>
    %cst_27 = arith.constant dense<0.000000e+00> : vector<8x32xf32>
    %57 = tpu.matmul %55, %56, %cst_27 {dimension_numbers = #tpu.dot_dimension_numbers<[1], [0], [0], [1], [0, 0, 1, 1], [], []>} : vector<8x32xbf16>, vector<32x32xbf16>, vector<8x32xf32> -> vector<8x32xf32>
    %58 = arith.truncf %57 : vector<8x32xf32> to vector<8x32xbf16>
    %59 = tpu.iota {dimensions = array<i32: 1>} : vector<8x8xi32>
    %60 = arith.index_cast %arg0 : i32 to index
    %61 = memref.load %arg2[%60] : memref<2xi32, #tpu.memory_space<smem>>
    %62 = vector.broadcast %61 : i32 to vector<8x8xi32>
    %63 = arith.cmpi sge, %59, %62 : vector<8x8xi32>
    %c0_28 = arith.constant 0 : index
    %c0_29 = arith.constant 0 : index
    %64 = vector.load %arg7[%c0_28, %c0_29] : memref<32x32xbf16, #tpu.memory_space<vmem>>, vector<32x32xbf16>
    %cst_30 = arith.constant 0.000000e+00 : f32
    %65 = vector.broadcast %cst_30 : f32 to vector<8x32xf32>
    %66 = vector.extract_strided_slice %54 {offsets = [0, 0], sizes = [8, 8], strides = [1, 1]} : vector<8x32xf32> to vector<8x8xf32>
    %67 = arith.truncf %66 : vector<8x8xf32> to vector<8x8xbf16>
    %68 = vector.extract_strided_slice %58 {offsets = [0, 0], sizes = [8, 8], strides = [1, 1]} : vector<8x32xbf16> to vector<8x8xbf16>
    %cst_31 = arith.constant dense<0.000000e+00> : vector<8x8xf32>
    %69 = tpu.matmul %67, %68, %cst_31 {dimension_numbers = #tpu.dot_dimension_numbers<[1], [1], [0], [0], [0, 0, 1, 0], [], []>} : vector<8x8xbf16>, vector<8x8xbf16>, vector<8x8xf32> -> vector<8x8xf32>
    %cst_32 = arith.constant -1.000000e+30 : f32
    %70 = vector.broadcast %cst_32 : f32 to vector<8x8xf32>
    %71 = arith.select %63, %70, %69 : vector<8x8xi1>, vector<8x8xf32>
    %cst_33 = arith.constant 0.353553385 : f32
    %72 = vector.broadcast %cst_33 : f32 to vector<8x8xf32>
    %73 = arith.mulf %71, %72 : vector<8x8xf32>
    %cst_34 = arith.constant dense<0xFF800000> : vector<8xf32>
    %74 = vector.multi_reduction <maximumf>, %73, %cst_34 [1] : vector<8x8xf32> to vector<8xf32>
    %75 = vector.shape_cast %74 : vector<8xf32> to vector<8x1xf32>
    %76 = vector.broadcast %75 : vector<8x1xf32> to vector<8x8xf32>
    %77 = arith.subf %73, %76 : vector<8x8xf32>
    %78 = math.exp %77 : vector<8x8xf32>
    %cst_35 = arith.constant dense<0.000000e+00> : vector<8xf32>
    %79 = vector.multi_reduction <add>, %78, %cst_35 [1] : vector<8x8xf32> to vector<8xf32>
    %80 = vector.shape_cast %79 : vector<8xf32> to vector<8x1xf32>
    %81 = tpu.reciprocal %80 {approx = true} : vector<8x1xf32> -> vector<8x1xf32>
    %82 = vector.broadcast %81 : vector<8x1xf32> to vector<8x8xf32>
    %83 = arith.mulf %78, %82 : vector<8x8xf32>
    %84 = arith.truncf %83 : vector<8x8xf32> to vector<8x8xbf16>
    %cst_36 = arith.constant dense<0.000000e+00> : vector<8x8xf32>
    %85 = tpu.matmul %84, %68, %cst_36 {dimension_numbers = #tpu.dot_dimension_numbers<[1], [0], [0], [1], [0, 0, 1, 1], [], []>} : vector<8x8xbf16>, vector<8x8xbf16>, vector<8x8xf32> -> vector<8x8xf32>
    %86 = arith.truncf %85 : vector<8x8xf32> to vector<8x8xbf16>
    %87 = vector.extract_strided_slice %64 {offsets = [0, 0], sizes = [8, 32], strides = [1, 1]} : vector<32x32xbf16> to vector<8x32xbf16>
    %cst_37 = arith.constant dense<0.000000e+00> : vector<8x32xf32>
    %88 = tpu.matmul %86, %87, %cst_37 {dimension_numbers = #tpu.dot_dimension_numbers<[1], [0], [0], [1], [0, 0, 1, 1], [], []>} : vector<8x8xbf16>, vector<8x32xbf16>, vector<8x32xf32> -> vector<8x32xf32>
    %89 = arith.addf %65, %88 : vector<8x32xf32>
    %90 = vector.extract_strided_slice %54 {offsets = [0, 8], sizes = [8, 8], strides = [1, 1]} : vector<8x32xf32> to vector<8x8xf32>
    %91 = arith.truncf %90 : vector<8x8xf32> to vector<8x8xbf16>
    %92 = vector.extract_strided_slice %58 {offsets = [0, 8], sizes = [8, 8], strides = [1, 1]} : vector<8x32xbf16> to vector<8x8xbf16>
    %cst_38 = arith.constant dense<0.000000e+00> : vector<8x8xf32>
    %93 = tpu.matmul %91, %92, %cst_38 {dimension_numbers = #tpu.dot_dimension_numbers<[1], [1], [0], [0], [0, 0, 1, 0], [], []>} : vector<8x8xbf16>, vector<8x8xbf16>, vector<8x8xf32> -> vector<8x8xf32>
    %cst_39 = arith.constant -1.000000e+30 : f32
    %94 = vector.broadcast %cst_39 : f32 to vector<8x8xf32>
    %95 = arith.select %63, %94, %93 : vector<8x8xi1>, vector<8x8xf32>
    %cst_40 = arith.constant 0.353553385 : f32
    %96 = vector.broadcast %cst_40 : f32 to vector<8x8xf32>
    %97 = arith.mulf %95, %96 : vector<8x8xf32>
    %cst_41 = arith.constant dense<0xFF800000> : vector<8xf32>
    %98 = vector.multi_reduction <maximumf>, %97, %cst_41 [1] : vector<8x8xf32> to vector<8xf32>
    %99 = vector.shape_cast %98 : vector<8xf32> to vector<8x1xf32>
    %100 = vector.broadcast %99 : vector<8x1xf32> to vector<8x8xf32>
    %101 = arith.subf %97, %100 : vector<8x8xf32>
    %102 = math.exp %101 : vector<8x8xf32>
    %cst_42 = arith.constant dense<0.000000e+00> : vector<8xf32>
    %103 = vector.multi_reduction <add>, %102, %cst_42 [1] : vector<8x8xf32> to vector<8xf32>
    %104 = vector.shape_cast %103 : vector<8xf32> to vector<8x1xf32>
    %105 = tpu.reciprocal %104 {approx = true} : vector<8x1xf32> -> vector<8x1xf32>
    %106 = vector.broadcast %105 : vector<8x1xf32> to vector<8x8xf32>
    %107 = arith.mulf %102, %106 : vector<8x8xf32>
    %108 = arith.truncf %107 : vector<8x8xf32> to vector<8x8xbf16>
    %cst_43 = arith.constant dense<0.000000e+00> : vector<8x8xf32>
    %109 = tpu.matmul %108, %92, %cst_43 {dimension_numbers = #tpu.dot_dimension_numbers<[1], [0], [0], [1], [0, 0, 1, 1], [], []>} : vector<8x8xbf16>, vector<8x8xbf16>, vector<8x8xf32> -> vector<8x8xf32>
    %110 = arith.truncf %109 : vector<8x8xf32> to vector<8x8xbf16>
    %111 = vector.extract_strided_slice %64 {offsets = [8, 0], sizes = [8, 32], strides = [1, 1]} : vector<32x32xbf16> to vector<8x32xbf16>
    %cst_44 = arith.constant dense<0.000000e+00> : vector<8x32xf32>
    %112 = tpu.matmul %110, %111, %cst_44 {dimension_numbers = #tpu.dot_dimension_numbers<[1], [0], [0], [1], [0, 0, 1, 1], [], []>} : vector<8x8xbf16>, vector<8x32xbf16>, vector<8x32xf32> -> vector<8x32xf32>
    %113 = arith.addf %89, %112 : vector<8x32xf32>
    %114 = vector.extract_strided_slice %54 {offsets = [0, 16], sizes = [8, 8], strides = [1, 1]} : vector<8x32xf32> to vector<8x8xf32>
    %115 = arith.truncf %114 : vector<8x8xf32> to vector<8x8xbf16>
    %116 = vector.extract_strided_slice %58 {offsets = [0, 16], sizes = [8, 8], strides = [1, 1]} : vector<8x32xbf16> to vector<8x8xbf16>
    %cst_45 = arith.constant dense<0.000000e+00> : vector<8x8xf32>
    %117 = tpu.matmul %115, %116, %cst_45 {dimension_numbers = #tpu.dot_dimension_numbers<[1], [1], [0], [0], [0, 0, 1, 0], [], []>} : vector<8x8xbf16>, vector<8x8xbf16>, vector<8x8xf32> -> vector<8x8xf32>
    %cst_46 = arith.constant -1.000000e+30 : f32
    %118 = vector.broadcast %cst_46 : f32 to vector<8x8xf32>
    %119 = arith.select %63, %118, %117 : vector<8x8xi1>, vector<8x8xf32>
    %cst_47 = arith.constant 0.353553385 : f32
    %120 = vector.broadcast %cst_47 : f32 to vector<8x8xf32>
    %121 = arith.mulf %119, %120 : vector<8x8xf32>
    %cst_48 = arith.constant dense<0xFF800000> : vector<8xf32>
    %122 = vector.multi_reduction <maximumf>, %121, %cst_48 [1] : vector<8x8xf32> to vector<8xf32>
    %123 = vector.shape_cast %122 : vector<8xf32> to vector<8x1xf32>
    %124 = vector.broadcast %123 : vector<8x1xf32> to vector<8x8xf32>
    %125 = arith.subf %121, %124 : vector<8x8xf32>
    %126 = math.exp %125 : vector<8x8xf32>
    %cst_49 = arith.constant dense<0.000000e+00> : vector<8xf32>
    %127 = vector.multi_reduction <add>, %126, %cst_49 [1] : vector<8x8xf32> to vector<8xf32>
    %128 = vector.shape_cast %127 : vector<8xf32> to vector<8x1xf32>
    %129 = tpu.reciprocal %128 {approx = true} : vector<8x1xf32> -> vector<8x1xf32>
    %130 = vector.broadcast %129 : vector<8x1xf32> to vector<8x8xf32>
    %131 = arith.mulf %126, %130 : vector<8x8xf32>
    %132 = arith.truncf %131 : vector<8x8xf32> to vector<8x8xbf16>
    %cst_50 = arith.constant dense<0.000000e+00> : vector<8x8xf32>
    %133 = tpu.matmul %132, %116, %cst_50 {dimension_numbers = #tpu.dot_dimension_numbers<[1], [0], [0], [1], [0, 0, 1, 1], [], []>} : vector<8x8xbf16>, vector<8x8xbf16>, vector<8x8xf32> -> vector<8x8xf32>
    %134 = arith.truncf %133 : vector<8x8xf32> to vector<8x8xbf16>
    %135 = vector.extract_strided_slice %64 {offsets = [16, 0], sizes = [8, 32], strides = [1, 1]} : vector<32x32xbf16> to vector<8x32xbf16>
    %cst_51 = arith.constant dense<0.000000e+00> : vector<8x32xf32>
    %136 = tpu.matmul %134, %135, %cst_51 {dimension_numbers = #tpu.dot_dimension_numbers<[1], [0], [0], [1], [0, 0, 1, 1], [], []>} : vector<8x8xbf16>, vector<8x32xbf16>, vector<8x32xf32> -> vector<8x32xf32>
    %137 = arith.addf %113, %136 : vector<8x32xf32>
    %138 = vector.extract_strided_slice %54 {offsets = [0, 24], sizes = [8, 8], strides = [1, 1]} : vector<8x32xf32> to vector<8x8xf32>
    %139 = arith.truncf %138 : vector<8x8xf32> to vector<8x8xbf16>
    %140 = vector.extract_strided_slice %58 {offsets = [0, 24], sizes = [8, 8], strides = [1, 1]} : vector<8x32xbf16> to vector<8x8xbf16>
    %cst_52 = arith.constant dense<0.000000e+00> : vector<8x8xf32>
    %141 = tpu.matmul %139, %140, %cst_52 {dimension_numbers = #tpu.dot_dimension_numbers<[1], [1], [0], [0], [0, 0, 1, 0], [], []>} : vector<8x8xbf16>, vector<8x8xbf16>, vector<8x8xf32> -> vector<8x8xf32>
    %cst_53 = arith.constant -1.000000e+30 : f32
    %142 = vector.broadcast %cst_53 : f32 to vector<8x8xf32>
    %143 = arith.select %63, %142, %141 : vector<8x8xi1>, vector<8x8xf32>
    %cst_54 = arith.constant 0.353553385 : f32
    %144 = vector.broadcast %cst_54 : f32 to vector<8x8xf32>
    %145 = arith.mulf %143, %144 : vector<8x8xf32>
    %cst_55 = arith.constant dense<0xFF800000> : vector<8xf32>
    %146 = vector.multi_reduction <maximumf>, %145, %cst_55 [1] : vector<8x8xf32> to vector<8xf32>
    %147 = vector.shape_cast %146 : vector<8xf32> to vector<8x1xf32>
    %148 = vector.broadcast %147 : vector<8x1xf32> to vector<8x8xf32>
    %149 = arith.subf %145, %148 : vector<8x8xf32>
    %150 = math.exp %149 : vector<8x8xf32>
    %cst_56 = arith.constant dense<0.000000e+00> : vector<8xf32>
    %151 = vector.multi_reduction <add>, %150, %cst_56 [1] : vector<8x8xf32> to vector<8xf32>
    %152 = vector.shape_cast %151 : vector<8xf32> to vector<8x1xf32>
    %153 = tpu.reciprocal %152 {approx = true} : vector<8x1xf32> -> vector<8x1xf32>
    %154 = vector.broadcast %153 : vector<8x1xf32> to vector<8x8xf32>
    %155 = arith.mulf %150, %154 : vector<8x8xf32>
    %156 = arith.truncf %155 : vector<8x8xf32> to vector<8x8xbf16>
    %cst_57 = arith.constant dense<0.000000e+00> : vector<8x8xf32>
    %157 = tpu.matmul %156, %140, %cst_57 {dimension_numbers = #tpu.dot_dimension_numbers<[1], [0], [0], [1], [0, 0, 1, 1], [], []>} : vector<8x8xbf16>, vector<8x8xbf16>, vector<8x8xf32> -> vector<8x8xf32>
    %158 = arith.truncf %157 : vector<8x8xf32> to vector<8x8xbf16>
    %159 = vector.extract_strided_slice %64 {offsets = [24, 0], sizes = [8, 32], strides = [1, 1]} : vector<32x32xbf16> to vector<8x32xbf16>
    %cst_58 = arith.constant dense<0.000000e+00> : vector<8x32xf32>
    %160 = tpu.matmul %158, %159, %cst_58 {dimension_numbers = #tpu.dot_dimension_numbers<[1], [0], [0], [1], [0, 0, 1, 1], [], []>} : vector<8x8xbf16>, vector<8x32xbf16>, vector<8x32xf32> -> vector<8x32xf32>
    %161 = arith.addf %137, %160 : vector<8x32xf32>
    %162 = arith.addf %1, %161 : vector<8x32xf32>
    %c0_59 = arith.constant 0 : index
    %c0_60 = arith.constant 0 : index
    %163 = vector.load %arg10[%c0_59, %c0_60] : memref<1x32xf32, #tpu.memory_space<vmem>>, vector<1x32xf32>
    %c0_61 = arith.constant 0 : index
    %c0_62 = arith.constant 0 : index
    %164 = vector.load %arg11[%c0_61, %c0_62] : memref<1x32xf32, #tpu.memory_space<vmem>>, vector<1x32xf32>
    %cst_63 = arith.constant dense<0.000000e+00> : vector<8xf32>
    %165 = vector.multi_reduction <add>, %162, %cst_63 [1] : vector<8x32xf32> to vector<8xf32>
    %166 = vector.shape_cast %165 : vector<8xf32> to vector<8x1xf32>
    %cst_64 = arith.constant 3.200000e+01 : f32
    %167 = vector.broadcast %cst_64 : f32 to vector<8x1xf32>
    %168 = arith.divf %166, %167 : vector<8x1xf32>
    %169 = vector.broadcast %168 : vector<8x1xf32> to vector<8x32xf32>
    %170 = arith.subf %162, %169 : vector<8x32xf32>
    %171 = arith.mulf %170, %170 : vector<8x32xf32>
    %cst_65 = arith.constant dense<0.000000e+00> : vector<8xf32>
    %172 = vector.multi_reduction <add>, %171, %cst_65 [1] : vector<8x32xf32> to vector<8xf32>
    %173 = vector.shape_cast %172 : vector<8xf32> to vector<8x1xf32>
    %cst_66 = arith.constant 3.200000e+01 : f32
    %174 = vector.broadcast %cst_66 : f32 to vector<8x1xf32>
    %175 = arith.divf %173, %174 : vector<8x1xf32>
    %176 = vector.broadcast %168 : vector<8x1xf32> to vector<8x32xf32>
    %177 = arith.subf %162, %176 : vector<8x32xf32>
    %cst_67 = arith.constant 9.99999974E-6 : f32
    %178 = vector.broadcast %cst_67 : f32 to vector<8x1xf32>
    %179 = arith.addf %175, %178 : vector<8x1xf32>
    %180 = math.rsqrt %179 : vector<8x1xf32>
    %181 = vector.broadcast %180 : vector<8x1xf32> to vector<8x32xf32>
    %182 = arith.mulf %177, %181 : vector<8x32xf32>
    %183 = vector.broadcast %163 : vector<1x32xf32> to vector<8x32xf32>
    %184 = arith.mulf %182, %183 : vector<8x32xf32>
    %185 = vector.broadcast %164 : vector<1x32xf32> to vector<8x32xf32>
    %186 = arith.addf %184, %185 : vector<8x32xf32>
    %187 = arith.truncf %186 : vector<8x32xf32> to vector<8x32xbf16>
    %c0_68 = arith.constant 0 : index
    %c0_69 = arith.constant 0 : index
    %188 = vector.load %arg12[%c0_68, %c0_69] : memref<32x128xbf16, #tpu.memory_space<vmem>>, vector<32x128xbf16>
    %cst_70 = arith.constant dense<0.000000e+00> : vector<8x128xf32>
    %189 = tpu.matmul %187, %188, %cst_70 {dimension_numbers = #tpu.dot_dimension_numbers<[1], [0], [0], [1], [0, 0, 1, 1], [], []>} : vector<8x32xbf16>, vector<32x128xbf16>, vector<8x128xf32> -> vector<8x128xf32>
    %c0_71 = arith.constant 0 : index
    %c0_72 = arith.constant 0 : index
    %190 = vector.load %arg13[%c0_71, %c0_72] : memref<1x128xf32, #tpu.memory_space<vmem>>, vector<1x128xf32>
    %191 = vector.broadcast %190 : vector<1x128xf32> to vector<8x128xf32>
    %192 = arith.addf %189, %191 : vector<8x128xf32>
    %cst_73 = arith.constant 0.000000e+00 : f32
    %193 = vector.broadcast %cst_73 : f32 to vector<8x128xf32>
    %194 = arith.maximumf %192, %193 : vector<8x128xf32>
    %195 = arith.truncf %194 : vector<8x128xf32> to vector<8x128xbf16>
    %c0_74 = arith.constant 0 : index
    %c0_75 = arith.constant 0 : index
    %196 = vector.load %arg14[%c0_74, %c0_75] : memref<128x32xbf16, #tpu.memory_space<vmem>>, vector<128x32xbf16>
    %cst_76 = arith.constant dense<0.000000e+00> : vector<8x32xf32>
    %197 = tpu.matmul %195, %196, %cst_76 {dimension_numbers = #tpu.dot_dimension_numbers<[1], [0], [0], [1], [0, 0, 1, 1], [], []>} : vector<8x128xbf16>, vector<128x32xbf16>, vector<8x32xf32> -> vector<8x32xf32>
    %198 = arith.addf %162, %197 : vector<8x32xf32>
    %c0_77 = arith.constant 0 : index
    %c0_78 = arith.constant 0 : index
    %199 = vector.load %arg15[%c0_77, %c0_78] : memref<1x32xf32, #tpu.memory_space<vmem>>, vector<1x32xf32>
    %200 = vector.broadcast %199 : vector<1x32xf32> to vector<8x32xf32>
    %201 = arith.addf %198, %200 : vector<8x32xf32>
    %c0_79 = arith.constant 0 : index
    %c0_80 = arith.constant 0 : index
    %c0_81 = arith.constant 0 : index
    %202 = vector.load %arg16[%c0_79, %c0_80, %c0_81] : memref<1x8x32xf32, #tpu.memory_space<vmem>>, vector<1x8x32xf32>
    %203 = vector.shape_cast %202 : vector<1x8x32xf32> to vector<8x32xf32>
    %204 = vector.shape_cast %201 : vector<8x32xf32> to vector<1x8x32xf32>
    tpu.vector_store %arg16[%c0_79, %c0_80, %c0_81], %204 {strides = array<i32>} : memref<1x8x32xf32, #tpu.memory_space<vmem>>, vector<1x8x32xf32>,
    return
  }
  func.func @transform_0(%arg0: i32, %arg1: i32, %arg2: memref<2xi32, #tpu.memory_space<smem>>) -> (i32, i32, i32) {
    %c0_i32 = arith.constant 0 : i32
    %c0_i32_0 = arith.constant 0 : i32
    return %arg0, %arg1, %c0_i32 : i32, i32, i32
  }
  func.func @transform_1(%arg0: i32, %arg1: i32, %arg2: memref<2xi32, #tpu.memory_space<smem>>) -> (i32, i32, i32) {
    %c0_i32 = arith.constant 0 : i32
    %c0_i32_0 = arith.constant 0 : i32
    %c0_i32_1 = arith.constant 0 : i32
    return %arg0, %c0_i32, %c0_i32_0 : i32, i32, i32
  }
  func.func @transform_2(%arg0: i32, %arg1: i32, %arg2: memref<2xi32, #tpu.memory_space<smem>>) -> (i32, i32) {
    %c0_i32 = arith.constant 0 : i32
    %c0_i32_0 = arith.constant 0 : i32
    %c0_i32_1 = arith.constant 0 : i32
    return %c0_i32, %c0_i32_0 : i32, i32
  }
  func.func @transform_3(%arg0: i32, %arg1: i32, %arg2: memref<2xi32, #tpu.memory_space<smem>>) -> (i32, i32) {
    %c0_i32 = arith.constant 0 : i32
    %c0_i32_0 = arith.constant 0 : i32
    %c0_i32_1 = arith.constant 0 : i32
    return %c0_i32, %c0_i32_0 : i32, i32
  }
  func.func @transform_4(%arg0: i32, %arg1: i32, %arg2: memref<2xi32, #tpu.memory_space<smem>>) -> (i32, i32) {
    %c0_i32 = arith.constant 0 : i32
    %c0_i32_0 = arith.constant 0 : i32
    %c0_i32_1 = arith.constant 0 : i32
    return %c0_i32, %c0_i32_0 : i32, i32
  }
  func.func @transform_5(%arg0: i32, %arg1: i32, %arg2: memref<2xi32, #tpu.memory_space<smem>>) -> (i32, i32) {
    %c0_i32 = arith.constant 0 : i32
    %c0_i32_0 = arith.constant 0 : i32
    %c0_i32_1 = arith.constant 0 : i32
    return %c0_i32, %c0_i32_0 : i32, i32
  }
  func.func @transform_6(%arg0: i32, %arg1: i32, %arg2: memref<2xi32, #tpu.memory_space<smem>>) -> (i32, i32) {
    %c0_i32 = arith.constant 0 : i32
    %c0_i32_0 = arith.constant 0 : i32
    %c0_i32_1 = arith.constant 0 : i32
    return %c0_i32, %c0_i32_0 : i32, i32
  }
  func.func @transform_7(%arg0: i32, %arg1: i32, %arg2: memref<2xi32, #tpu.memory_space<smem>>) -> (i32, i32) {
    %c0_i32 = arith.constant 0 : i32
    %c0_i32_0 = arith.constant 0 : i32
    %c0_i32_1 = arith.constant 0 : i32
    return %c0_i32, %c0_i32_0 : i32, i32
  }
  func.func @transform_8(%arg0: i32, %arg1: i32, %arg2: memref<2xi32, #tpu.memory_space<smem>>) -> (i32, i32) {
    %c0_i32 = arith.constant 0 : i32
    %c0_i32_0 = arith.constant 0 : i32
    %c0_i32_1 = arith.constant 0 : i32
    return %c0_i32, %c0_i32_0 : i32, i32
  }
  func.func @transform_9(%arg0: i32, %arg1: i32, %arg2: memref<2xi32, #tpu.memory_space<smem>>) -> (i32, i32) {
    %c0_i32 = arith.constant 0 : i32
    %c0_i32_0 = arith.constant 0 : i32
    %c0_i32_1 = arith.constant 0 : i32
    return %c0_i32, %c0_i32_0 : i32, i32
  }
  func.func @transform_10(%arg0: i32, %arg1: i32, %arg2: memref<2xi32, #tpu.memory_space<smem>>) -> (i32, i32) {
    %c0_i32 = arith.constant 0 : i32
    %c0_i32_0 = arith.constant 0 : i32
    %c0_i32_1 = arith.constant 0 : i32
    return %c0_i32, %c0_i32_0 : i32, i32
  }
  func.func @transform_11(%arg0: i32, %arg1: i32, %arg2: memref<2xi32, #tpu.memory_space<smem>>) -> (i32, i32) {
    %c0_i32 = arith.constant 0 : i32
    %c0_i32_0 = arith.constant 0 : i32
    %c0_i32_1 = arith.constant 0 : i32
    return %c0_i32, %c0_i32_0 : i32, i32
  }
  func.func @transform_12(%arg0: i32, %arg1: i32, %arg2: memref<2xi32, #tpu.memory_space<smem>>) -> (i32, i32) {
    %c0_i32 = arith.constant 0 : i32
    %c0_i32_0 = arith.constant 0 : i32
    %c0_i32_1 = arith.constant 0 : i32
    return %c0_i32, %c0_i32_0 : i32, i32
  }
  func.func @transform_13(%arg0: i32, %arg1: i32, %arg2: memref<2xi32, #tpu.memory_space<smem>>) -> (i32, i32, i32) {
    %c0_i32 = arith.constant 0 : i32
    %c0_i32_0 = arith.constant 0 : i32
    return %arg0, %arg1, %c0_i32 : i32, i32, i32
  }
}

</mosaic_0001>

<bundles_post_ra>
// kernel: tpu_custom_call.1
= control target key start
LH: loop header
LB: loop body
LE: loop exit
PB: predicated region body
PF: predicated region fallthrough
CT: control target
= control target key end

     0   :  { %s2062_s29 = smov [#allocation3]   ;;  %s2493_s0 = inlined_call_operand.hbm [shape: s32[2], index: 0, kind: input, shape index: {}]   ;;  %s2494_s1 = inlined_call_operand.vmem [shape: f32[2,8,32], index: 1, kind: input, shape index: {}]   ;;  %s2495_s2 = inlined_call_operand.vmem [shape: f32[2,8,32], index: 2, kind: input, shape index: {}]   ;;  %s2496_s3 = inlined_call_operand.vmem [shape: bf16[32,32], index: 3, kind: input, shape index: {}]   ;;  %s2497_s4 = inlined_call_operand.vmem [shape: bf16[32,32], index: 4, kind: input, shape index: {}]   ;;  %s2498_s5 = inlined_call_operand.vmem [shape: bf16[32,32], index: 5, kind: input, shape index: {}]   ;;  %s2499_s6 = inlined_call_operand.vmem [shape: f32[1,32], index: 6, kind: input, shape index: {}]   ;;  %s2500_s7 = inlined_call_operand.vmem [shape: f32[1,32], index: 7, kind: input, shape index: {}]   ;;  %s2501_s8 = inlined_call_operand.vmem [shape: f32[1,32], index: 8, kind: input, shape index: {}]   ;;  %s2502_s9 = inlined_call_operand.vmem [shape: f32[1,32], index: 9, kind: input, shape index: {}]   ;;  %s2503_s10 = inlined_call_operand.hbm [shape: bf16[32,128], index: 10, kind: input, shape index: {}]   ;;  %s2504_s11 = inlined_call_operand.vmem [shape: f32[1,128], index: 11, kind: input, shape index: {}]   ;;  %s2505_s12 = inlined_call_operand.vmem [shape: bf16[128,32], index: 12, kind: input, shape index: {}]   ;;  %s2506_s13 = inlined_call_operand.vmem [shape: f32[1,32], index: 13, kind: input, shape index: {}]   ;;  %s2507_s14 = inlined_call_operand.hbm [shape: f32[2,8,32], index: 14, kind: output, shape index: {}]  }
   0x1   :  { %20 = dma.hbm_to_smem %s2493_s0, 16, %s2062_s29, [#allocation2] }
   0x2   :  { %2028 = dma.done.wait [#allocation2], 16 }
   0x3   :  { %2029 = vsyncadd [#allocation2], 4294967280 }
   0x4   :  { %22 = sfence }
   0x5   :  { %23 = vsyncpa [#allocation5], 0 }
   0x6   :  { %24 = vsyncpa [#allocation6], 0 }
   0x7   :  { %26 = vsyncpa [#allocation6 + $0x1], 0  ;;  %s2150_s16 = smov 0   ;;  %s2152_s17 = smov 0  }
   0x8   :  { %s2154_s18 = smov 0   ;;  %s2156_s19 = smov 0  }
   0x9   :  { %s2158_s20 = smov 0   ;;  %s2160_s21 = smov 0  }
   0xa LB: > { %2512 = sst [smem:[#allocation11_spill]] %s2048_s18  ;;  %s1627_s0 = sadd.s32 4294967295, %s2060_s21   ;;  %s2060_s21 = sphi %s2160_s21, %s32_s21   ;;  %s2056_s20 = sphi %s2158_s20, %s2527_s20   ;;  %s2052_s19 = sphi %s2156_s19, %s2526_s19   ;;  %s2048_s18 = sphi %s2154_s18, %s2525_s18   ;;  %s2044_s17 = sphi %s2152_s17, %s2529_s17   ;;  %s2040_s16 = sphi %s2150_s16, %s2528_s16  }
   0xb   : > { %2513 = sst [smem:[#allocation12_spill]] %s2056_s20  ;;  %s1628_s22 = sadd.s32 4294967294, %s2060_s21  }
   0xc   : > { %s44_s23 = sadd.s32 1, %s2056_s20  ;;  %s338_s24 = sadd.s32 1, %s2048_s18 }
   0xd   : > { %p46_p0 = scmp.ge.s32.totalorder %s44_s23, 2  ;;  %p348_p1 = scmp.ne.s32.totalorder %s2048_s18, %s2044_s17 }
   0xe   : > { %p349_p2 = scmp.eq.s32.totalorder %s1627_s0, 1  ;;  %p354_p3 = scmp.ne.s32.totalorder %s2044_s17, %s2040_s16 }
   0xf   : > { %s2531_s23 = smov (%p46_p0, %s44_s23), 0  ;;  %p355_p5 = scmp.eq.s32.totalorder %s1628_s22, 1 }
  0x10   : > { %2514 = sst [smem:[#allocation13_spill]] %s2531_s23  ;;  %p2190_p4 = por %p349_p2, %p348_p1 }
  0x11   : > { %s333_s26 = ssub.s32 %s2056_s20, %s2531_s23  ;;  %p1629_p6 = scmp.ge.s32.totalorder %s2060_s21, 1 }
  0x12   : > { %p336_p7 = scmp.eq.s32.totalorder %s333_s26, 0  ;;  %p2197_p8 = por %p355_p5, %p354_p3 }
  0x13   : > { %p362_p9 = scmp.lt.s32.totalorder %s2060_s21, 3  ;;  %p2209_p11 = scmp.eq.s32.totalorder %s1627_s0, 0 }
  0x14   : > { %s2516_s27 = scalar_select %p2197_p8, 1, 0 }
  0x15   : > { %s2203_s28 = scalar_select %p336_p7, %s2048_s18, %s338_s24  }
  0x16   : > { %2517 = sst [smem:[#allocation14_spill]] %s2516_s27  ;;  %p2205_p10 = pnand %p1629_p6, %p362_p9 }
  0x17   : > { %2518 = sst [smem:[#allocation15_spill]] %s2203_s28  ;;  %s2063_s15 = smov [#allocation4]  }
  0x18   : > { %p1840_p12 = pneg %p2205_p10  ;;  %s395_s22 = sshll.u32 %s2063_s15, 4  ;;  %s396_s22 = int_to_ptr.vmem [resolvable:$true] %s395_s22 }
  0x19   : > { %s1963_s24 = scalar_lea.vmem %s396_s22, 256  ;;  %p1971_p5 = scmp.lt.s32.totalorder %s396_s22, %s396_s22 }
  0x1a   : > { %p1841_p13 = pnand %p2209_p11, %p1840_p12  ;;  %p1964_p1 = scmp.ne.s32.totalorder %s396_s22, %s1963_s24 }
  0x1b   : > { %p1972_p6 = scmp.lt.s32.totalorder %s1963_s24, %s1963_s24 }
  0x1c   : > { %p1954_p0 = pneg %p1841_p13 }
  0x1d   : > { %p1973_p7 = por %p1972_p6, %p1971_p5 }
  0x1e   : > { %p1966_p2 = pnand %p1964_p1, %p1954_p0 }
  0x20   : > { %p1967_p3 = pneg %p1966_p2 }
  0x22   : > { %p1974_p9 = pnand %p1973_p7, %p1967_p3 }
  0x24   : > { %1977 = shalt.err (!%p1974_p9)
}
  0x25   : > { %s2064_s0 = smov 64   ;;  %s2065_s26 = smov 4  }
  0x26   : > { %1843 = dma.hbm_to_vmem [thread:$0]  (!%p1841_p13), %s2503_s10, 256, %s396_s22, [#allocation5], %s2064_s0, %s2064_s0, %s2065_s26  }
  0x27   : > { %437 = sbr.rel (%p2205_p10) target bundleno = 3541 (0xdd5), region = 72 }
  0x2c   : > { %2031 = dma.done.wait (%p2209_p11), [#allocation5], 256  }
  0x2d   : > { %2033 = vsyncadd (%p2209_p11), [#allocation5], 4294967040  ;;  %p487_p12 = scmp.lt.s32.totalorder %s2052_s19, 1  ;;  %vm503_vm0 = vcmask 261120   ;;  %v1908_v14 = vld [vmem:[%s2496_s3 + $0x8] sm:$0xff]   ;;  %v2066_v15 = vmov 0.0   ;;  %v668_v52 = vlaneseq }
  0x2e   : > { %1718 = vmatprep.subr.bf16.mxu0 %v2066_v15  ;;  %vm2067_vm1 = vmmov 0   ;;  %v1909_v16 = vld [vmem:[%s2496_s3] sm:$0xff]   ;;  %1740 = vmatprep.subr.bf16.mxu1 %v2066_v15  ;;  %v1910_v31 = vld [vmem:[%s2497_s4 + $0x8] sm:$0xff]   ;;  %s2068_s18 = smov 120   ;;  %vm678_vm2 = vcmask 64512   ;;  %vm742_vm3 = vcmask 1043456  }
  0x2f   : > { %s488_s15 = scalar_select %p487_p12, %s2052_s19, 1  ;;  %1722 = vmatprep.mubr.msk.bf16.mxu0 %vm2067_vm1, %v2066_v15  ;;  %1719 = vmatpush3.bf16.msra.mxu0 %v1908_v14  ;;  %v1637_v24 = vld [vmem:[%s2499_s6] ss:$0 sm:$0xff]  ;;  %v669_v53 = vand.u32 127, %v668_v52 }
  0x30   : > { %1720 = vmatprep.subr.bf16.mxu0 %v2066_v15  ;;  %1742 = vmatprep.mubr.msk.bf16.mxu1 %vm2067_vm1, %v2066_v15  ;;  %v1638_v26 = vld [vmem:[%s2500_s7] ss:$0 sm:$0xff]  ;;  %s2069_s28 = smov 112   ;;  %s484_s23 = sand.u32 1, %s2044_s17  }
  0x31   : > { %s1635_s24 = sshll.u32 %s488_s15, 3  ;;  %v1911_v34 = vld [vmem:[%s2497_s4] sm:$0xff]   ;;  %s2070_s15 = smov 104  }
  0x32   : > { %s493_s27 = scalar_lea.vmem %s2494_s1, %s1635_s24  ;;  %s497_s29 = scalar_lea.vmem %s2495_s2, %s1635_s24 }
  0x33   : > { %v2234_v0 = vld [vmem:[%s493_s27] sm:$0xff]  ;;  %1721 = vmatpush3.bf16.msra.mxu0 %v1909_v16  ;;  %s670_s27 = sld [smem:[#allocation3 + %s2052_s19]]  ;;  %s2071_s20 = smov [#allocation7]  }
  0x34   : > { %v500_v1 = vld [vmem:[%s497_s29] sm:$0xff]  ;;  %v504_v2 = vsel %vm503_vm0, %v2234_v0, 0.0  ;;  %1726 = vmatprep.subr.bf16.mxu0 %v2066_v15  ;;  %s1634_s29 = sshll.u32 %s484_s23, 3 }
  0x35   : > { %v532_v3 = vsel %vm503_vm0, %v500_v1, 0.0  ;;  %505 = vadd.xlane.f32.xlu0 %v504_v2  ;;  %s486_s30 = scalar_lea.vmem [#allocation7], %s1634_s29  ;;  %s1982_s29 = sshll.u32 %s2071_s20, 4  ;;  %s1983_s29 = int_to_ptr.vmem [resolvable:$false] %s1982_s29 }
  0x36   : > { %s1532_s22 = sshll.u32 %s486_s30, 4  ;;  %s2448_s22 = int_to_ptr.vmem [resolvable:$true] %s1532_s22 }
  0x37   : > { %s1978_s24 = scalar_lea.vmem %s2448_s22, 128  ;;  %p1985_p0 = scmp.lt.s32.totalorder %s2448_s22, %s1983_s29 }
  0x38   : > { %p1979_p10 = scmp.ne.s32.totalorder %s2448_s22, %s1978_s24 }
  0x39   : > { %533 = vadd.xlane.f32.xlu0 %v532_v3  ;;  %v671_v54 = vstv %s670_s27 }
  0x3a   : > { %vm2298_vm4 = vcmp.ge.s32.totalorder %v669_v53, %v671_v54  ;;  %p1980_p11 = pnand %p1979_p10, %p2190_p4 }
  0x3c   : > { %p1981_p13 = pneg %p1980_p11 }
  0xbe   : > { %v506_v4 = vpop.xlane.xlu0 %505 }
  0xbf   : > { %v508_v5 = vmul.f32 0.03125, %v506_v4 }
  0xc1   : > { %v509_v6 = vsub.f32 %v2234_v0, %v508_v5 }
  0xc2   : > { %v534_v7 = vpop.xlane.xlu0 %533 }
  0xc3   : > { %v535_v8 = vmul.f32 0.03125, %v534_v7  ;;  %v510_v9 = vmul.f32 %v509_v6, %v509_v6 }
  0xc5   : > { %v536_v10 = vsub.f32 %v500_v1, %v535_v8  ;;  %v511_v11 = vsel %vm503_vm0, %v510_v9, 0.0 }
  0xc6   : > { %512 = vadd.xlane.f32.xlu1 %v511_v11 }
  0xc7   : > { %v537_v12 = vmul.f32 %v536_v10, %v536_v10 }
  0xc9   : > { %v538_v13 = vsel %vm503_vm0, %v537_v12, 0.0 }
  0xca   : > { %539 = vadd.xlane.f32.xlu1 %v538_v13 }
 0x14f   : > { %v513_v17 = vpop.xlane.xlu1 %512 }
 0x150   : > { %v514_v18 = vmul.f32 0.03125, %v513_v17 }
 0x152   : > { %v515_v19 = vadd.f32 1e-05, %v514_v18 }
 0x153   : > { %v540_v20 = vpop.xlane.xlu1 %539 }
 0x154   : > { %1922 = vrsqrt.f32 %v515_v19  ;;  %v541_v21 = vmul.f32 0.03125, %v540_v20 }
 0x156   : > { %v542_v22 = vadd.f32 1e-05, %v541_v21 }
 0x158   : > { %1924 = vrsqrt.f32 %v542_v22 }
 0x161   : > { %v1923_v23 = vpop.eup %1922 }
 0x162   : > { %v517_v25 = vmul.f32 %v1923_v23, %v509_v6  ;;  %v674_v23 = vld [vmem:[%s2498_s5 + $0x4] sm:$0xf] }
 0x164   : > { %v524_v27 = vmul.f32 %v1637_v24, %v517_v25 }
 0x165   : > { %v1925_v28 = vpop.eup %1924 }
 0x166   : > { %v531_v29 = vadd.f32 %v1638_v26, %v524_v27  ;;  %v544_v30 = vmul.f32 %v1925_v28, %v536_v10  ;;  %v673_v27 = vld [vmem:[%s2498_s5] sm:$0xf] }
 0x168   : > { %v545_v32 = vmul.f32 %v1637_v24, %v544_v30  ;;  %v547_v33 = vpack.c.bf16 %v531_v29, %v531_v29  ;;  %v902_v24 = vsel %vm742_vm3, %v674_v23, 0  ;;  %v948_v30 = vsel %vm742_vm3, %v673_v27, 0 }
 0x16a   : > { %1723 = vmatmul.mubr.msk.bf16.vlgmr.msra.gmra.mxu0 %vm503_vm0, %v547_v33  ;;  %v546_v35 = vadd.f32 %v1638_v26, %v545_v32 }
 0x16b   : > { %1727 = vmatpush3.bf16.msra.mxu0 %v1910_v31  ;;  %1730 = vmatprep.mubr.msk.bf16.mxu0 %vm2067_vm1, %v2066_v15 }
 0x16c   : > { %1728 = vmatprep.subr.bf16.mxu0 %v2066_v15  ;;  %v607_v36 = vpack.c.bf16 %v546_v35, %v546_v35 }
 0x16f   : > { %1729 = vmatpush3.bf16.msra.mxu0 %v1911_v34 }
 0x170   : > { %1734 = vmatprep.subr.bf16.mxu0 %v2066_v15 }
 0x172   : > { %1731 = vmatmul.mubr.msk.bf16.vlgmr.msra.gmra.mxu0 %vm503_vm0, %v607_v36 }
 0x173   : > { %1736 = vmatprep.mubr.msk.bf16.mxu0 %vm2067_vm1, %v2066_v15 }
 0x22a   : > { %v601_v37 = vpop.f32.mrf.mxu0 }
 0x22b   : > { %v2276_v38 = vpack.c.bf16 %v601_v37, %v601_v37 }
 0x22c   : > { %v1724_v39 = vpop.f32.mrf.mxu0 }
 0x22d   : > { %787 = vrot.lane.b32.xlu1 %v2276_v38, %s2068_s18 }
 0x22e   : > { %v604_v40 = vpop.f32.mrf.mxu0 }
 0x230   : > { %v1725_v41 = vpop.f32.mrf.mxu0 }
 0x232   : > { %v661_v42 = vpop.f32.mrf.mxu0 }
 0x233   : > { %v2279_v43 = vpack.c.bf16 %v661_v42, %v661_v42 }
 0x234   : > { %v1732_v44 = vpop.f32.mrf.mxu0 }
 0x235   : > { %790 = vrot.lane.b32.xlu0 %v2279_v43, %s2068_s18  ;;  %v683_v45 = vsel %vm678_vm2, %v2279_v43, 0  ;;  %v743_v46 = vsel %vm742_vm3, %v2279_v43, 0  ;;  %s1984_s18 = scalar_lea.vmem %s1983_s29, 256 }
 0x236   : > { %v664_v47 = vpop.f32.mrf.mxu0  ;;  %1735 = vmatpush3.bf16.xpose.msra.mxu0 %v683_v45  ;;  %1741 = vmatpush3.bf16.msra.mxu1 %v743_v46  ;;  %p1986_p1 = scmp.lt.s32.totalorder %s1984_s18, %s1978_s24 }
 0x237   : > { %1746 = vmatprep.subr.bf16.mxu0 %v2066_v15  ;;  %1752 = vmatprep.subr.bf16.mxu1 %v2066_v15 }
 0x238   : > { %v1733_v48 = vpop.f32.mrf.mxu0  ;;  %p1987_p2 = por %p1986_p1, %p1985_p0 }
 0x23a   : > { %p1988_p3 = pnand %p1987_p2, %p1981_p13 }
 0x23d   : > { %1737 = vmatmul.mubr.msk.bf16.vlgmr.msra.gmra.mxu0 %vm678_vm2, %v2276_v38 }
 0x23e   : > { %1748 = vmatprep.mubr.msk.bf16.mxu0 %vm2067_vm1, %v2066_v15 }
 0x29f   : > { %v788_v51 = vpop.permute.xlu1 %787 }
 0x2a7   : > { %v791_v49 = vpop.permute.xlu0 %790 }
 0x2a8   : > { %v796_v50 = vsel %vm678_vm2, %v791_v49, 0  ;;  %v855_v22 = vsel %vm742_vm3, %v791_v49, 0 }
 0x2a9   : > { %1747 = vmatpush3.bf16.xpose.msra.mxu0 %v796_v50 }
 0x2aa   : > { %1758 = vmatprep.subr.bf16.mxu0 %v2066_v15 }
 0x2b0   : > { %1749 = vmatmul.mubr.msk.bf16.vlgmr.msra.gmra.mxu0 %vm678_vm2, %v788_v51 }
 0x2b1   : > { %1760 = vmatprep.mubr.msk.bf16.mxu0 %vm2067_vm1, %v2066_v15  ;;  %1759 = vmatpush3.bf16.msra.mxu0 %v902_v24 }
 0x2b2   : > { %1770 = vmatprep.subr.bf16.mxu0 %v2066_v15 }
 0x2fd   : > { %v719_v56 = vpop.f32.mrf.mxu0 }
 0x2fe   : > { %v725_v57 = vsel %vm2298_vm4, -1e+30, %v719_v56 }
 0x2ff   : > { %v726_v58 = vmul.f32 0.35355338, %v725_v57  ;;  %v1738_v59 = vpop.f32.mrf.mxu0 }
 0x301   : > { %v722_v60 = vpop.f32.mrf.mxu0  ;;  %v727_v61 = vsel %vm678_vm2, %v726_v58, -inf }
 0x302   : > { %728 = vmax.xlane.f32.xlu1 %v727_v61 }
 0x303   : > { %v1739_v62 = vpop.f32.mrf.mxu0 }
 0x370   : > { %v832_v63 = vpop.f32.mrf.mxu0 }
 0x371   : > { %v838_v1 = vsel %vm2298_vm4, -1e+30, %v832_v63 }
 0x372   : > { %v839_v2 = vmul.f32 0.35355338, %v838_v1  ;;  %v1750_v3 = vpop.f32.mrf.mxu0 }
 0x374   : > { %v835_v4 = vpop.f32.mrf.mxu0  ;;  %v840_v5 = vsel %vm678_vm2, %v839_v2, -inf }
 0x375   : > { %841 = vmax.xlane.f32.xlu0 %v840_v5  ;;  %v675_v5 = vld [vmem:[%s2498_s5 + $0x8] sm:$0xf] }
 0x376   : > { %v1751_v6 = vpop.f32.mrf.mxu0 }
 0x377   : > { %v1104_v6 = vsel %vm742_vm3, %v675_v5, 0  ;;  %v1919_v5 = vld [vmem:[%s2505_s12 + $0x10] sm:$0xff]  }
 0x38b   : > { %v729_v7 = vpop.xlane.xlu1 %728 }
 0x38c   : > { %v730_v8 = vsub.f32 %v726_v58, %v729_v7 }
 0x38e   : > { %v731_v9 = vmul.f32 1.442695, %v730_v8 }
 0x390   : > { %1926 = vpow2.f32 %v731_v9 }
 0x39d   : > { %v1927_v10 = vpop.eup %1926 }
 0x39e   : > { %v733_v11 = vsel %vm678_vm2, %v1927_v10, 0.0 }
 0x39f   : > { %734 = vadd.xlane.f32.xlu0 %v733_v11 }
 0x3b5   : > { %992 = vrot.lane.b32.xlu0 %v2279_v43, %s2069_s28 }
 0x3fe   : > { %v842_v12 = vpop.xlane.xlu0 %841 }
 0x3ff   : > { %v843_v13 = vsub.f32 %v839_v2, %v842_v12 }
 0x401   : > { %v844_v14 = vmul.f32 1.442695, %v843_v13 }
 0x403   : > { %1928 = vpow2.f32 %v844_v14 }
 0x410   : > { %v1929_v16 = vpop.eup %1928 }
 0x411   : > { %v846_v17 = vsel %vm678_vm2, %v1929_v16, 0.0 }
 0x412   : > { %847 = vadd.xlane.f32.xlu1 %v846_v17 }
 0x423   : > { %990 = vrot.lane.b32.xlu1 %v2276_v38, %s2069_s28  ;;  %s1673_s28 = sshll.u32 %s2052_s19, 7  ;;  %s1518_s19 = scalar_lea.sflag [#allocation6], %s484_s23 }
 0x428   : > { %v735_v18 = vpop.xlane.xlu0 %734 }
 0x429   : > { %1930 = vrcp.f32 %v735_v18 }
 0x42c   : > { %v993_v31 = vpop.permute.xlu0 %992 }
 0x42d   : > { %v1057_v35 = vsel %vm742_vm3, %v993_v31, 0  ;;  %v998_v42 = vsel %vm678_vm2, %v993_v31, 0 }
 0x436   : > { %v1931_v19 = vpop.eup %1930 }
 0x437   : > { %v737_v20 = vmul.f32 %v1931_v19, %v1927_v10 }
 0x439   : > { %v738_v21 = vpack.c.bf16 %v737_v20, %v737_v20 }
 0x43b   : > { %1743 = vmatmul.mubr.msk.bf16.vlgmr.msra.gmra.mxu1 %vm678_vm2, %v738_v21 }
 0x43c   : > { %1753 = vmatpush3.bf16.msra.mxu1 %v855_v22  ;;  %1754 = vmatprep.mubr.msk.bf16.mxu1 %vm2067_vm1, %v2066_v15 }
 0x43d   : > { %1764 = vmatprep.subr.bf16.mxu1 %v2066_v15 }
 0x49b   : > { %v848_v25 = vpop.xlane.xlu1 %847 }
 0x49c   : > { %1932 = vrcp.f32 %v848_v25 }
 0x49f   : > { %v991_v46 = vpop.permute.xlu1 %990 }
 0x4a9   : > { %v1933_v26 = vpop.eup %1932 }
 0x4aa   : > { %v850_v28 = vmul.f32 %v1933_v26, %v1929_v16 }
 0x4ac   : > { %v851_v29 = vpack.c.bf16 %v850_v28, %v850_v28 }
 0x4ae   : > { %1755 = vmatmul.mubr.msk.bf16.vlgmr.msra.gmra.mxu1 %vm678_vm2, %v851_v29 }
 0x4af   : > { %1765 = vmatpush3.bf16.msra.mxu1 %v948_v30  ;;  %1766 = vmatprep.mubr.msk.bf16.mxu1 %vm2067_vm1, %v2066_v15 }
 0x4b0   : > { %1776 = vmatprep.subr.bf16.mxu1 %v2066_v15 }
 0x4fb   : > { %v779_v32 = vpop.f32.mrf.mxu1 }
 0x4fc   : > { %v785_v33 = vpack.c.bf16 %v779_v32, %v779_v32 }
 0x4fd   : > { %v1744_v34 = vpop.f32.mrf.mxu1 }
 0x4fe   : > { %1767 = vmatmul.mubr.msk.bf16.vlgmr.msra.gmra.mxu1 %vm678_vm2, %v785_v33  ;;  %v676_v34 = vld [vmem:[%s2498_s5 + $0xc] sm:$0xf] }
 0x4ff   : > { %1777 = vmatpush3.bf16.msra.mxu1 %v1057_v35  ;;  %v782_v36 = vpop.f32.mrf.mxu1  ;;  %1778 = vmatprep.mubr.msk.bf16.mxu1 %vm2067_vm1, %v2066_v15 }
 0x500   : > { %1788 = vmatprep.subr.bf16.mxu1 %v2066_v15  ;;  %v1261_v36 = vsel %vm742_vm3, %v676_v34, 0 }
 0x501   : > { %v1745_v37 = vpop.f32.mrf.mxu1 }
 0x56e   : > { %v891_v39 = vpop.f32.mrf.mxu1 }
 0x56f   : > { %v897_v40 = vpack.c.bf16 %v891_v39, %v891_v39 }
 0x570   : > { %v1756_v41 = vpop.f32.mrf.mxu1 }
 0x571   : > { %1761 = vmatmul.mubr.msk.bf16.vlgmr.msra.gmra.mxu0 %vm678_vm2, %v897_v40 }
 0x572   : > { %1771 = vmatpush3.bf16.xpose.msra.mxu0 %v998_v42  ;;  %v894_v44 = vpop.f32.mrf.mxu1  ;;  %1772 = vmatprep.mubr.msk.bf16.mxu0 %vm2067_vm1, %v2066_v15 }
 0x573   : > { %1782 = vmatprep.subr.bf16.mxu0 %v2066_v15 }
 0x574   : > { %v1757_v45 = vpop.f32.mrf.mxu1 }
 0x579   : > { %1773 = vmatmul.mubr.msk.bf16.vlgmr.msra.gmra.mxu0 %vm678_vm2, %v991_v46 }
 0x57a   : > { %1784 = vmatprep.mubr.msk.bf16.mxu0 %vm2067_vm1, %v2066_v15  ;;  %1783 = vmatpush3.bf16.msra.mxu0 %v1104_v6 }
 0x57b   : > { %1794 = vmatprep.subr.bf16.mxu0 %v2066_v15 }
 0x5be   : > { %v2343_v47 = vpop.f32.mrf.mxu1 }
 0x5c0   : > { %v1768_v48 = vpop.f32.mrf.mxu1 }
 0x5c2   : > { %v987_v49 = vpop.f32.mrf.mxu1 }
 0x5c4   : > { %v1769_v50 = vpop.f32.mrf.mxu1 }
 0x631   : > { %v2345_v51 = vpop.f32.mrf.mxu0 }
 0x632   : > { %v985_v31 = vadd.f32 %v2343_v47, %v2345_v51 }
 0x633   : > { %v1762_v52 = vpop.f32.mrf.mxu0 }
 0x635   : > { %v941_v53 = vpop.f32.mrf.mxu0 }
 0x637   : > { %v1763_v54 = vpop.f32.mrf.mxu0 }
 0x639   : > { %v1034_v56 = vpop.f32.mrf.mxu0 }
 0x63a   : > { %v1040_v57 = vsel %vm2298_vm4, -1e+30, %v1034_v56 }
 0x63b   : > { %v1041_v58 = vmul.f32 0.35355338, %v1040_v57  ;;  %v1774_v59 = vpop.f32.mrf.mxu0 }
 0x63d   : > { %v1037_v60 = vpop.f32.mrf.mxu0  ;;  %v1042_v61 = vsel %vm678_vm2, %v1041_v58, -inf }
 0x63e   : > { %1043 = vmax.xlane.f32.xlu1 %v1042_v61 }
 0x63f   : > { %v1775_v62 = vpop.f32.mrf.mxu0 }
 0x640   : > { %v1912_v62 = vld [vmem:[#allocation4 + $0x8] sm:$0xff]  }
 0x64f   : > { %1147 = vrot.lane.b32.xlu1 %v2276_v38, %s2070_s15 }
 0x6c7   : > { %v1044_v63 = vpop.xlane.xlu1 %1043 }
 0x6c8   : > { %v1045_v1 = vsub.f32 %v1041_v58, %v1044_v63  ;;  %v1913_v63 = vld [vmem:[#allocation4] sm:$0xff]  }
 0x6ca   : > { %v1046_v2 = vmul.f32 1.442695, %v1045_v1  ;;  %v1915_v1 = vld [vmem:[%s2505_s12 + $0x30] sm:$0xff]  }
 0x6cc   : > { %1934 = vpow2.f32 %v1046_v2  ;;  %v1916_v2 = vld [vmem:[%s2505_s12 + $0x28] sm:$0xff]  }
 0x6d9   : > { %v1935_v3 = vpop.eup %1934 }
 0x6da   : > { %v1048_v4 = vsel %vm678_vm2, %v1935_v3, 0.0 }
 0x6db   : > { %1049 = vadd.xlane.f32.xlu0 %v1048_v4  ;;  %v1918_v4 = vld [vmem:[%s2505_s12 + $0x18] sm:$0xff]  }
 0x6f1   : > { %1149 = vrot.lane.b32.xlu0 %v2279_v43, %s2070_s15  ;;  %v1148_v43 = vpop.permute.xlu1 %1147  ;;  %s2446_s15 = scalar_lea.hbm %s2507_s14, %s1673_s28 }
 0x764   : > { %v1050_v38 = vpop.xlane.xlu0 %1049 }
 0x765   : > { %1936 = vrcp.f32 %v1050_v38 }
 0x768   : > { %v1150_v9 = vpop.permute.xlu0 %1149 }
 0x769   : > { %v1155_v11 = vsel %vm678_vm2, %v1150_v9, 0  ;;  %v1214_v16 = vsel %vm742_vm3, %v1150_v9, 0  ;;  %v1657_v9 = vld [vmem:[%s2501_s8] ss:$0 sm:$0xff] }
 0x772   : > { %v1937_v7 = vpop.eup %1936 }
 0x773   : > { %v1052_v8 = vmul.f32 %v1937_v7, %v1935_v3  ;;  %v1917_v3 = vld [vmem:[%s2505_s12 + $0x20] sm:$0xff]  }
 0x775   : > { %v1053_v10 = vpack.c.bf16 %v1052_v8, %v1052_v8 }
 0x777   : > { %1779 = vmatmul.mubr.msk.bf16.vlgmr.msra.gmra.mxu1 %vm678_vm2, %v1053_v10 }
 0x778   : > { %1789 = vmatpush3.bf16.xpose.msra.mxu1 %v1155_v11  ;;  %1790 = vmatprep.mubr.msk.bf16.mxu1 %vm2067_vm1, %v2066_v15  ;;  %v1658_v11 = vld [vmem:[%s2502_s9] ss:$0 sm:$0xff] }
 0x779   : > { %1800 = vmatprep.subr.bf16.mxu1 %v2066_v15 }
 0x77f   : > { %1791 = vmatmul.mubr.msk.bf16.vlgmr.msra.gmra.mxu1 %vm678_vm2, %v1148_v43 }
 0x780   : > { %1802 = vmatprep.mubr.msk.bf16.mxu1 %vm2067_vm1, %v2066_v15  ;;  %1801 = vmatpush3.bf16.msra.mxu1 %v1261_v36 }
 0x781   : > { %1814 = vmatprep.subr.bf16.mxu1 %v2066_v15 }
 0x837   : > { %v1093_v12 = vpop.f32.mrf.mxu1 }
 0x838   : > { %v1099_v13 = vpack.c.bf16 %v1093_v12, %v1093_v12 }
 0x839   : > { %v1780_v14 = vpop.f32.mrf.mxu1 }
 0x83a   : > { %1785 = vmatmul.mubr.msk.bf16.vlgmr.msra.gmra.mxu0 %vm678_vm2, %v1099_v13  ;;  %v1920_v14 = vld [vmem:[%s2505_s12 + $0x8] sm:$0xff]  }
 0x83b   : > { %1795 = vmatpush3.bf16.msra.mxu0 %v1214_v16  ;;  %v1096_v17 = vpop.f32.mrf.mxu1  ;;  %1796 = vmatprep.mubr.msk.bf16.mxu0 %vm2067_vm1, %v2066_v15  ;;  %v1921_v16 = vld [vmem:[%s2505_s12] sm:$0xff]  }
 0x83c   : > { %1806 = vmatprep.subr.bf16.mxu0 %v2066_v15  ;;  %v1659_v17 = vld [vmem:[%s2504_s11] ss:$0 sm:$0xff] }
 0x83d   : > { %v1781_v18 = vpop.f32.mrf.mxu1 }
 0x83f   : > { %v1191_v19 = vpop.f32.mrf.mxu1 }
 0x840   : > { %v1197_v20 = vsel %vm2298_vm4, -1e+30, %v1191_v19 }
 0x841   : > { %v1198_v21 = vmul.f32 0.35355338, %v1197_v20  ;;  %v1792_v22 = vpop.f32.mrf.mxu1 }
 0x843   : > { %v1194_v23 = vpop.f32.mrf.mxu1  ;;  %v1199_v24 = vsel %vm678_vm2, %v1198_v21, -inf }
 0x844   : > { %1200 = vmax.xlane.f32.xlu1 %v1199_v24 }
 0x845   : > { %v1793_v25 = vpop.f32.mrf.mxu1 }
 0x846   : > { %v1671_v25 = vld [vmem:[%s2506_s13] ss:$0 sm:$0xff] }
 0x8cd   : > { %v1201_v26 = vpop.xlane.xlu1 %1200 }
 0x8ce   : > { %v1202_v27 = vsub.f32 %v1198_v21, %v1201_v26 }
 0x8d0   : > { %v1203_v28 = vmul.f32 1.442695, %v1202_v27 }
 0x8d2   : > { %1938 = vpow2.f32 %v1203_v28 }
 0x8df   : > { %v1939_v29 = vpop.eup %1938 }
 0x8e0   : > { %v1205_v30 = vsel %vm678_vm2, %v1939_v29, 0.0 }
 0x8e1   : > { %1206 = vadd.xlane.f32.xlu0 %v1205_v30 }
 0x8fa   : > { %v1140_v55 = vpop.f32.mrf.mxu0 }
 0x8fb   : > { %v1146_v32 = vadd.f32 %v1140_v55, %v985_v31 }
 0x8fc   : > { %v1786_v33 = vpop.f32.mrf.mxu0 }
 0x8fe   : > { %v1143_v35 = vpop.f32.mrf.mxu0 }
 0x900   : > { %v1787_v37 = vpop.f32.mrf.mxu0 }
 0x96a   : > { %v1207_v39 = vpop.xlane.xlu0 %1206 }
 0x96b   : > { %1940 = vrcp.f32 %v1207_v39 }
 0x978   : > { %v1941_v40 = vpop.eup %1940 }
 0x979   : > { %v1209_v41 = vmul.f32 %v1941_v40, %v1939_v29 }
 0x97b   : > { %v1210_v42 = vpack.c.bf16 %v1209_v41, %v1209_v41 }
 0x97d   : > { %1797 = vmatmul.mubr.msk.bf16.vlgmr.msra.gmra.mxu0 %vm678_vm2, %v1210_v42 }
 0x97e   : > { %1810 = vmatprep.mubr.msk.bf16.mxu0 %vm2067_vm1, %v2066_v15  ;;  %1807 = vmatpush3.bf16.msra.mxu0 %v1912_v62 }
 0x97f   : > { %1808 = vmatprep.subr.bf16.mxu0 %v2066_v15 }
 0x982   : > { %1809 = vmatpush3.bf16.msra.mxu0 %v1913_v63 }
 0xa3d   : > { %v1250_v44 = vpop.f32.mrf.mxu0 }
 0xa3e   : > { %v1256_v45 = vpack.c.bf16 %v1250_v44, %v1250_v44 }
 0xa3f   : > { %v1798_v46 = vpop.f32.mrf.mxu0 }
 0xa40   : > { %1803 = vmatmul.mubr.msk.bf16.vlgmr.msra.gmra.mxu1 %vm678_vm2, %v1256_v45 }
 0xa41   : > { %v1253_v47 = vpop.f32.mrf.mxu0  ;;  %1830 = vmatprep.mubr.msk.bf16.mxu1 %vm2067_vm1, %v2066_v15 }
 0xa43   : > { %v1799_v48 = vpop.f32.mrf.mxu0 }
 0xb00   : > { %v1297_v49 = vpop.f32.mrf.mxu1 }
 0xb01   : > { %v1303_v50 = vadd.f32 %v1297_v49, %v1146_v32 }
 0xb02   : > { %v1804_v51 = vpop.f32.mrf.mxu1 }
 0xb03   : > { %v2389_v52 = vadd.f32 %v1303_v50, %v2234_v0  ;;  %v1914_v0 = vld [vmem:[%s2505_s12 + $0x38] sm:$0xff]  }
 0xb04   : > { %v1300_v53 = vpop.f32.mrf.mxu1  ;;  %1815 = vmatpush3.bf16.msra.mxu1 %v1914_v0 }
 0xb05   : > { %v1307_v54 = vsel %vm503_vm0, %v2389_v52, 0.0  ;;  %1816 = vmatprep.subr.bf16.mxu1 %v2066_v15 }
 0xb06   : > { %1308 = vadd.xlane.f32.xlu0 %v1307_v54  ;;  %v1805_v56 = vpop.f32.mrf.mxu1 }
 0xb08   : > { %1817 = vmatpush3.bf16.msra.mxu1 %v1915_v1 }
 0xb09   : > { %1818 = vmatprep.subr.bf16.mxu1 %v2066_v15 }
 0xb0c   : > { %1819 = vmatpush3.bf16.msra.mxu1 %v1916_v2 }
 0xb0d   : > { %1820 = vmatprep.subr.bf16.mxu1 %v2066_v15 }
 0xb10   : > { %1821 = vmatpush3.bf16.msra.mxu1 %v1917_v3 }
 0xb11   : > { %1822 = vmatprep.subr.bf16.mxu1 %v2066_v15 }
 0xb14   : > { %1823 = vmatpush3.bf16.msra.mxu1 %v1918_v4 }
 0xb15   : > { %1824 = vmatprep.subr.bf16.mxu1 %v2066_v15 }
 0xb18   : > { %1825 = vmatpush3.bf16.msra.mxu1 %v1919_v5 }
 0xb19   : > { %1826 = vmatprep.subr.bf16.mxu1 %v2066_v15 }
 0xb1c   : > { %1827 = vmatpush3.bf16.msra.mxu1 %v1920_v14 }
 0xb1d   : > { %1828 = vmatprep.subr.bf16.mxu1 %v2066_v15 }
 0xb20   : > { %1829 = vmatpush3.bf16.msra.mxu1 %v1921_v16 }
 0xb8f   : > { %v1309_v57 = vpop.xlane.xlu0 %1308 }
 0xb90   : > { %v1310_v58 = vmul.f32 0.03125, %v1309_v57 }
 0xb92   : > { %v1311_v59 = vsub.f32 %v2389_v52, %v1310_v58 }
 0xb94   : > { %v1312_v60 = vmul.f32 %v1311_v59, %v1311_v59 }
 0xb96   : > { %v1313_v61 = vsel %vm503_vm0, %v1312_v60, 0.0 }
 0xb97   : > { %1314 = vadd.xlane.f32.xlu1 %v1313_v61 }
 0xc20   : > { %v1315_v6 = vpop.xlane.xlu1 %1314 }
 0xc21   : > { %v1316_v38 = vmul.f32 0.03125, %v1315_v6 }
 0xc23   : > { %v1317_v7 = vadd.f32 1e-05, %v1316_v38 }
 0xc25   : > { %1942 = vrsqrt.f32 %v1317_v7 }
 0xc32   : > { %v1943_v8 = vpop.eup %1942 }
 0xc33   : > { %v1319_v10 = vmul.f32 %v1943_v8, %v1311_v59 }
 0xc35   : > { %v1326_v43 = vmul.f32 %v1657_v9, %v1319_v10 }
 0xc37   : > { %v1333_v12 = vadd.f32 %v1658_v11, %v1326_v43 }
 0xc39   : > { %v1334_v13 = vpack.c.bf16 %v1333_v12, %v1333_v12 }
 0xc3b   : > { %1811 = vmatmul.mubr.msk.bf16.vlgmr.msra.gmra.mxu0 %vm503_vm0, %v1334_v13 }
 0xcfb   : > { %v1395_v18 = vpop.f32.mrf.mxu0 }
 0xcfc   : > { %v1396_v19 = vadd.f32 %v1659_v17, %v1395_v18 }
 0xcfd   : > { %v1812_v20 = vpop.f32.mrf.mxu0 }
 0xcfe   : > { %v1401_v21 = vmax.f32 %v1396_v19, 0.0 }
 0xcff   : > { %v1398_v22 = vpop.f32.mrf.mxu0 }
 0xd00   : > { %v1402_v23 = vpack.c.bf16 %v1401_v21, %v1401_v21 }
 0xd01   : > { %v1813_v24 = vpop.f32.mrf.mxu0 }
 0xd02   : > { %1831 = vmatmul.mubr.bf16.vlgmr.msra.gmra.mxu1 %v1402_v23 }
 0xdc2   : > { %v1501_v15 = vpop.f32.mrf.mxu1 }
 0xdc3   : > { %v1507_v26 = vadd.f32 %v1501_v15, %v2389_v52 }
 0xdc4   : > { %v1832_v27 = vpop.f32.mrf.mxu1 }
 0xdc5   : > { %v1515_v28 = vadd.f32 %v1671_v25, %v1507_v26 }
 0xdc6   : > { %v1504_v29 = vpop.f32.mrf.mxu1 }
 0xdc7   : > { %1516 = vst.msk [vmem:[%s486_s30] sm:$0xff] %vm503_vm0, %v1515_v28 }
 0xdc8   : > { %v1833_v30 = vpop.f32.mrf.mxu1 }
 0xdc9   : > { %1991 = shalt.err (!%p1988_p3)
}
 0xdca   : > { %s1992_s27 = scalar_lea.hbm %s2446_s15, 128  ;;  %s1996_s30 = scalar_lea.hbm %s2507_s14, 256 }
 0xdcb   : > { %p1993_p5 = scmp.ne.s32.totalorder %s2446_s15, %s1992_s27  ;;  %p1997_p9 = scmp.lt.s32.totalorder %s2446_s15, %s2507_s14 }
 0xdcc   : > { %p1998_p12 = scmp.lt.s32.totalorder %s1996_s30, %s1992_s27 }
 0xdcd   : > { %p1994_p6 = pnand %p1993_p5, %p2190_p4 }
 0xdce   : > { %p1999_p10 = por %p1998_p12, %p1997_p9 }
 0xdcf   : > { %p1995_p7 = pneg %p1994_p6 }
 0xdd1   : > { %p2000_p11 = pnand %p1999_p10, %p1995_p7 }
 0xdd3   : > { %2003 = shalt.err (!%p2000_p11)
}
 0xdd4   : > { %1838 = dma.vmem_to_hbm [thread:$0]  (%p2190_p4), %s2448_s22, 128, %s2446_s15, %s1518_s19  }
 0xdd5 PF: > { %p1850_p13 = scmp.ge.s32.totalorder %s2060_s21, 2  ;;  %s1544_s20 = sand.u32 1, %s2040_s16  }
 0xdd6   : > { %s1545_s29 = scalar_lea.sflag [#allocation6], %s1544_s20 }
 0xdd7   : > { %p1845_p0 = pnand %p1850_p13, %p2197_p8 }
 0xdd9   : > { %p1846_p1 = pneg %p1845_p0 }
 0xddb   : > { %2035 = dma.done.wait (%p1846_p1), %s1545_s29, 128  }
 0xddc   : > { %2037 = vsyncadd (%p1846_p1), %s1545_s29, 4294967168  ;;  %s32_s21 = sadd.s32 1, %s2060_s21   ;;  %s2524_s25 = sld [smem:[#allocation11_spill]] }
 0xddd   : > { %p29_p2 = scmp.ge.s32.totalorder %s32_s21, 4   ;;  %s2525_s18 = sld [smem:[#allocation15_spill]] }
 0xdde   : > { %s2526_s19 = sld [smem:[#allocation12_spill]]  ;;  %s2528_s16 = smov %s2044_s17 }
 0xddf   : > { %s2527_s20 = sld [smem:[#allocation13_spill]]  ;;  %31 = sbr.rel (!%p29_p2) target bundleno = 10 (0xa), region = 115 }
 0xde2   : > { %s2529_s17 = smov %s2524_s25 }
 0xde4   :  { %1550 = vsyncpa [#allocation5], 1 }
 0xde5   :  { %1552 = vsyncpa [#allocation5 + $0x1], 1 }
 0xde6   :  { %1553 = vsyncpa [#allocation6], 1 }
 0xde7   :  { %1555 = vsyncpa [#allocation6 + $0x1], 1 }

</bundles_post_ra>
